<compile_context>
chip_gen: v7x
topology: tpu7x:2x2x1
jax: 0.10.0
libtpu: 0.0.40
codegen_flags: <defaults>
</compile_context>

<pallas_src>
import functools

import jax
import jax.numpy as jnp
from jax.experimental import pallas as pl
from jax.experimental.pallas import tpu as pltpu


def _critic_fused_kernel(*refs, n_layers: int):
    """Fused forward for one batch tile.

    refs = (state_ref, action_ref,
            w0s_ref, w0a_ref, b0_ref,          # first layer (concat folded in)
            w1_ref, b1_ref, ..., wL_ref, bL_ref,
            out_ref)
    """
    state_ref, action_ref = refs[0], refs[1]
    out_ref = refs[-1]
    wb = refs[2:-1]

    # Layer 0: x = relu(state @ W0s + action @ W0a + b0)  (concat fused away).
    x = jnp.dot(state_ref[...], wb[0][...], preferred_element_type=jnp.float32)
    x = x + jnp.dot(action_ref[...], wb[1][...], preferred_element_type=jnp.float32)
    x = jnp.maximum(x + wb[2][...], 0.0)

    # Remaining layers, statically unrolled; activations live in VMEM/vregs only.
    idx = 3
    for layer in range(1, n_layers):
        w = wb[idx][...]
        b = wb[idx + 1][...]
        idx += 2
        y = jnp.dot(x, w, preferred_element_type=jnp.float32) + b
        x = jnp.maximum(y, 0.0) if layer < n_layers - 1 else y

    out_ref[...] = x.astype(out_ref.dtype)


def init_critic_params(key, state_dim, action_dim, hidden_layers):
    """Deterministic init matching PyTorch nn.Linear shapes (stored transposed)."""
    dims = [state_dim + action_dim] + list(hidden_layers) + [1]
    params = []
    for i in range(len(dims) - 1):
        fan_in, fan_out = dims[i], dims[i + 1]
        key, kw, kb = jax.random.split(key, 3)
        bound = 1.0 / jnp.sqrt(fan_in)
        w = jax.random.uniform(kw, (fan_in, fan_out), jnp.float32, -bound, bound)
        b = jax.random.uniform(kb, (1, fan_out), jnp.float32, -bound, bound)
        params.append((w, b))
    return params


def critic_forward(params, state, action, *, max_batch_tile: int = 256):
    """Fused Critic forward. state:(B,S), action:(B,A) -> (B,1)."""
    B, S = state.shape
    A = action.shape[1]
    n_layers = len(params)

    # Batch tile: multiple of 8, capped so per-tile VMEM stays tiny.
    TB = min(max_batch_tile, max(B, 8))
    TB = max(8, (TB // 8) * 8)
    n_blocks = pl.cdiv(B, TB)
    Bp = n_blocks * TB
    if Bp != B:
        pad = Bp - B
        state = jnp.pad(state, ((0, pad), (0, 0)))
        action = jnp.pad(action, ((0, pad), (0, 0)))

    # Split the first-layer weight so the concat is folded into the kernel.
    w0, b0 = params[0]
    w0s, w0a = w0[:S, :], w0[S:, :]
    weight_args = [w0s, w0a, b0]
    for w, b in params[1:]:
        weight_args.extend([w, b])

    def batch_tiled(shape):
        return pl.BlockSpec((TB,) + shape[1:], lambda i: (i,) + (0,) * (len(shape) - 1))

    def resident(shape):  # weights/biases: same block every grid step -> stay in VMEM
        return pl.BlockSpec(shape, lambda i: (0,) * len(shape))

    in_specs = [batch_tiled(state.shape), batch_tiled(action.shape)]
    in_specs += [resident(a.shape) for a in weight_args]
    # TODO(synk): out last-dim is 1 (< 128 lanes) -> masked vst; negligible here,
    # fuse into the consumer if this head ever feeds a larger downstream kernel.
    out_spec = pl.BlockSpec((TB, 1), lambda i: (i, 0))

    kernel = functools.partial(_critic_fused_kernel, n_layers=n_layers)
    out = pl.pallas_call(
        kernel,
        out_shape=jax.ShapeDtypeStruct((Bp, 1), jnp.float32),
        grid_spec=pl.GridSpec(
            grid=(n_blocks,),
            in_specs=in_specs,
            out_specs=out_spec,
        ),
        compiler_params=pltpu.CompilerParams(
            dimension_semantics=("parallel",)),
    )(state, action, *weight_args)

    return out[:B]


def _reference_forward(params, state, action):
    x = jnp.concatenate([state, action], axis=1)
    for w, b in params[:-1]:
        x = jnp.maximum(x @ w + b, 0.0)
    return x @ params[-1][0] + params[-1][1]


if __name__ == "__main__":
    state_dim = 16
    action_dim = 8
    hidden_layers = [32, 32]

    key = jax.random.PRNGKey(0)
    kp, ks, ka = jax.random.split(key, 3)
    params = init_critic_params(kp, state_dim, action_dim, hidden_layers)

    # Small case: single grid step.
    batch = 8
    state = jax.random.normal(ks, (batch, state_dim), jnp.float32)
    action = jax.random.normal(ka, (batch, action_dim), jnp.float32)
    out = critic_forward(params, state, action)
    jax.block_until_ready(out)
    ref = _reference_forward(params, state, action)
    assert out.shape == (batch, 1)
    assert jnp.allclose(out, ref, atol=1e-5, rtol=1e-5)

    # Larger / non-multiple-of-8 batch: exercises batch grid + padding path.
    batch2 = 200
    ks2, ka2 = jax.random.split(jax.random.PRNGKey(1))
    state2 = jax.random.normal(ks2, (batch2, state_dim), jnp.float32)
    action2 = jax.random.normal(ka2, (batch2, action_dim), jnp.float32)
    out2 = critic_forward(params, state2, action2, max_batch_tile=64)
    jax.block_until_ready(out2)
    ref2 = _reference_forward(params, state2, action2)
    assert out2.shape == (batch2, 1)
    assert jnp.allclose(out2, ref2, atol=1e-5, rtol=1e-5)

    print("KERNEL_OK")
</pallas_src>

<mosaic_0001>
module attributes {stable_mosaic.version = 11 : i64} {
  func.func @_critic_fused_kernel(%arg0: i32, %arg1: memref<8x16xf32, #tpu.memory_space<vmem>>, %arg2: memref<8x8xf32, #tpu.memory_space<vmem>>, %arg3: memref<16x32xf32, #tpu.memory_space<vmem>>, %arg4: memref<8x32xf32, #tpu.memory_space<vmem>>, %arg5: memref<1x32xf32, #tpu.memory_space<vmem>>, %arg6: memref<32x32xf32, #tpu.memory_space<vmem>>, %arg7: memref<1x32xf32, #tpu.memory_space<vmem>>, %arg8: memref<32x1xf32, #tpu.memory_space<vmem>>, %arg9: memref<1x1xf32, #tpu.memory_space<vmem>>, %arg10: memref<8x1xf32, #tpu.memory_space<vmem>>) attributes {dimension_semantics = [#tpu.dimension_semantics<parallel>], iteration_bounds = array<i64: 1>, scalar_prefetch = 0 : i64, scratch_operands = 0 : i64, tpu.core_type = #tpu.core_type<tc>, window_params = [{transform_indices = @transform_0, window_bounds = array<i64: 8, 16>}, {transform_indices = @transform_1, window_bounds = array<i64: 8, 8>}, {pipeline_mode = #tpu.pipeline_mode<synchronous>, transform_indices = @transform_2, window_bounds = array<i64: 16, 32>}, {pipeline_mode = #tpu.pipeline_mode<synchronous>, transform_indices = @transform_3, window_bounds = array<i64: 8, 32>}, {pipeline_mode = #tpu.pipeline_mode<synchronous>, transform_indices = @transform_4, window_bounds = array<i64: 1, 32>}, {pipeline_mode = #tpu.pipeline_mode<synchronous>, transform_indices = @transform_5, window_bounds = array<i64: 32, 32>}, {pipeline_mode = #tpu.pipeline_mode<synchronous>, transform_indices = @transform_6, window_bounds = array<i64: 1, 32>}, {pipeline_mode = #tpu.pipeline_mode<synchronous>, transform_indices = @transform_7, window_bounds = array<i64: 32, 1>}, {pipeline_mode = #tpu.pipeline_mode<synchronous>, transform_indices = @transform_8, window_bounds = array<i64: 1, 1>}, {transform_indices = @transform_9, window_bounds = array<i64: 8, 1>}]} {
    %c0 = arith.constant 0 : index
    %c0_0 = arith.constant 0 : index
    %0 = vector.load %arg1[%c0, %c0_0] : memref<8x16xf32, #tpu.memory_space<vmem>>, vector<8x16xf32>
    %c0_1 = arith.constant 0 : index
    %c0_2 = arith.constant 0 : index
    %1 = vector.load %arg3[%c0_1, %c0_2] : memref<16x32xf32, #tpu.memory_space<vmem>>, vector<16x32xf32>
    %cst = arith.constant dense<0.000000e+00> : vector<8x32xf32>
    %2 = tpu.matmul %0, %1, %cst {dimension_numbers = #tpu.dot_dimension_numbers<[1], [0], [0], [1], [0, 0, 1, 1], [], []>} : vector<8x16xf32>, vector<16x32xf32>, vector<8x32xf32> -> vector<8x32xf32>
    %c0_3 = arith.constant 0 : index
    %c0_4 = arith.constant 0 : index
    %3 = vector.load %arg2[%c0_3, %c0_4] : memref<8x8xf32, #tpu.memory_space<vmem>>, vector<8x8xf32>
    %c0_5 = arith.constant 0 : index
    %c0_6 = arith.constant 0 : index
    %4 = vector.load %arg4[%c0_5, %c0_6] : memref<8x32xf32, #tpu.memory_space<vmem>>, vector<8x32xf32>
    %cst_7 = arith.constant dense<0.000000e+00> : vector<8x32xf32>
    %5 = tpu.matmul %3, %4, %cst_7 {dimension_numbers = #tpu.dot_dimension_numbers<[1], [0], [0], [1], [0, 0, 1, 1], [], []>} : vector<8x8xf32>, vector<8x32xf32>, vector<8x32xf32> -> vector<8x32xf32>
    %6 = arith.addf %2, %5 : vector<8x32xf32>
    %c0_8 = arith.constant 0 : index
    %c0_9 = arith.constant 0 : index
    %7 = vector.load %arg5[%c0_8, %c0_9] : memref<1x32xf32, #tpu.memory_space<vmem>>, vector<1x32xf32>
    %8 = vector.broadcast %7 : vector<1x32xf32> to vector<8x32xf32>
    %9 = arith.addf %6, %8 : vector<8x32xf32>
    %cst_10 = arith.constant 0.000000e+00 : f32
    %10 = vector.broadcast %cst_10 : f32 to vector<8x32xf32>
    %11 = arith.maximumf %9, %10 : vector<8x32xf32>
    %c0_11 = arith.constant 0 : index
    %c0_12 = arith.constant 0 : index
    %12 = vector.load %arg6[%c0_11, %c0_12] : memref<32x32xf32, #tpu.memory_space<vmem>>, vector<32x32xf32>
    %c0_13 = arith.constant 0 : index
    %c0_14 = arith.constant 0 : index
    %13 = vector.load %arg7[%c0_13, %c0_14] : memref<1x32xf32, #tpu.memory_space<vmem>>, vector<1x32xf32>
    %cst_15 = arith.constant dense<0.000000e+00> : vector<8x32xf32>
    %14 = tpu.matmul %11, %12, %cst_15 {dimension_numbers = #tpu.dot_dimension_numbers<[1], [0], [0], [1], [0, 0, 1, 1], [], []>} : vector<8x32xf32>, vector<32x32xf32>, vector<8x32xf32> -> vector<8x32xf32>
    %15 = vector.broadcast %13 : vector<1x32xf32> to vector<8x32xf32>
    %16 = arith.addf %14, %15 : vector<8x32xf32>
    %cst_16 = arith.constant 0.000000e+00 : f32
    %17 = vector.broadcast %cst_16 : f32 to vector<8x32xf32>
    %18 = arith.maximumf %16, %17 : vector<8x32xf32>
    %c0_17 = arith.constant 0 : index
    %c0_18 = arith.constant 0 : index
    %19 = vector.load %arg8[%c0_17, %c0_18] : memref<32x1xf32, #tpu.memory_space<vmem>>, vector<32x1xf32>
    %c0_19 = arith.constant 0 : index
    %c0_20 = arith.constant 0 : index
    %20 = vector.load %arg9[%c0_19, %c0_20] : memref<1x1xf32, #tpu.memory_space<vmem>>, vector<1x1xf32>
    %cst_21 = arith.constant dense<0.000000e+00> : vector<8x1xf32>
    %21 = tpu.matmul %18, %19, %cst_21 {dimension_numbers = #tpu.dot_dimension_numbers<[1], [0], [0], [1], [0, 0, 1, 1], [], []>} : vector<8x32xf32>, vector<32x1xf32>, vector<8x1xf32> -> vector<8x1xf32>
    %22 = vector.broadcast %20 : vector<1x1xf32> to vector<8x1xf32>
    %23 = arith.addf %21, %22 : vector<8x1xf32>
    %c0_22 = arith.constant 0 : index
    %c0_23 = arith.constant 0 : index
    %24 = vector.load %arg10[%c0_22, %c0_23] : memref<8x1xf32, #tpu.memory_space<vmem>>, vector<8x1xf32>
    tpu.vector_store %arg10[%c0_22, %c0_23], %23 {strides = array<i32>} : memref<8x1xf32, #tpu.memory_space<vmem>>, vector<8x1xf32>,
    return
  }
  func.func @transform_0(%arg0: i32) -> (i32, i32) {
    %c0_i32 = arith.constant 0 : i32
    %c0_i32_0 = arith.constant 0 : i32
    return %arg0, %c0_i32 : i32, i32
  }
  func.func @transform_1(%arg0: i32) -> (i32, i32) {
    %c0_i32 = arith.constant 0 : i32
    %c0_i32_0 = arith.constant 0 : i32
    return %arg0, %c0_i32 : i32, i32
  }
  func.func @transform_2(%arg0: i32) -> (i32, i32) {
    %c0_i32 = arith.constant 0 : i32
    %c0_i32_0 = arith.constant 0 : i32
    %c0_i32_1 = arith.constant 0 : i32
    return %c0_i32, %c0_i32_0 : i32, i32
  }
  func.func @transform_3(%arg0: i32) -> (i32, i32) {
    %c0_i32 = arith.constant 0 : i32
    %c0_i32_0 = arith.constant 0 : i32
    %c0_i32_1 = arith.constant 0 : i32
    return %c0_i32, %c0_i32_0 : i32, i32
  }
  func.func @transform_4(%arg0: i32) -> (i32, i32) {
    %c0_i32 = arith.constant 0 : i32
    %c0_i32_0 = arith.constant 0 : i32
    %c0_i32_1 = arith.constant 0 : i32
    return %c0_i32, %c0_i32_0 : i32, i32
  }
  func.func @transform_5(%arg0: i32) -> (i32, i32) {
    %c0_i32 = arith.constant 0 : i32
    %c0_i32_0 = arith.constant 0 : i32
    %c0_i32_1 = arith.constant 0 : i32
    return %c0_i32, %c0_i32_0 : i32, i32
  }
  func.func @transform_6(%arg0: i32) -> (i32, i32) {
    %c0_i32 = arith.constant 0 : i32
    %c0_i32_0 = arith.constant 0 : i32
    %c0_i32_1 = arith.constant 0 : i32
    return %c0_i32, %c0_i32_0 : i32, i32
  }
  func.func @transform_7(%arg0: i32) -> (i32, i32) {
    %c0_i32 = arith.constant 0 : i32
    %c0_i32_0 = arith.constant 0 : i32
    %c0_i32_1 = arith.constant 0 : i32
    return %c0_i32, %c0_i32_0 : i32, i32
  }
  func.func @transform_8(%arg0: i32) -> (i32, i32) {
    %c0_i32 = arith.constant 0 : i32
    %c0_i32_0 = arith.constant 0 : i32
    %c0_i32_1 = arith.constant 0 : i32
    return %c0_i32, %c0_i32_0 : i32, i32
  }
  func.func @transform_9(%arg0: i32) -> (i32, i32) {
    %c0_i32 = arith.constant 0 : i32
    %c0_i32_0 = arith.constant 0 : i32
    return %arg0, %c0_i32 : i32, i32
  }
}

</mosaic_0001>

<bundles_post_ra>
// kernel: tpu_custom_call.1
= control target key start
LH: loop header
LB: loop body
LE: loop exit
PB: predicated region body
PF: predicated region fallthrough
CT: control target
= control target key end

     0   :  { %s694_s0 = inlined_call_operand.hbm [shape: f32[8,16], index: 0, kind: input, shape index: {}]   ;;  %s695_s1 = inlined_call_operand.hbm [shape: f32[8,8], index: 1, kind: input, shape index: {}]   ;;  %s696_s2 = inlined_call_operand.vmem [shape: f32[16,32], index: 2, kind: input, shape index: {}]   ;;  %s697_s3 = inlined_call_operand.hbm [shape: f32[8,32], index: 3, kind: input, shape index: {}]   ;;  %s698_s4 = inlined_call_operand.vmem [shape: f32[1,32], index: 4, kind: input, shape index: {}]   ;;  %s699_s5 = inlined_call_operand.vmem [shape: f32[32,32], index: 5, kind: input, shape index: {}]   ;;  %s700_s6 = inlined_call_operand.vmem [shape: f32[1,32], index: 6, kind: input, shape index: {}]   ;;  %s701_s7 = inlined_call_operand.vmem [shape: f32[32,1], index: 7, kind: input, shape index: {}]   ;;  %s702_s8 = inlined_call_operand.<no memory space> [shape: f32[1,1], index: 8, kind: input, shape index: {}]   ;;  %s703_s9 = inlined_call_operand.vmem [shape: f32[8,1], index: 9, kind: output, shape index: {}]  }
   0x1   :  { %v14_v0 = vstv %s702_s8 }
   0x2   :  { %15 = vst [vmem:[#allocation2] sm:$0x1] %v14_v0 }
   0x3   :  { %16 = vsyncpa [#allocation4], 0 }
   0x4   :  { %17 = vsyncpa [#allocation6], 0  ;;  %s556_s11 = smov [#allocation5]   ;;  %s557_s13 = smov [#allocation3]  }
   0x5   :  { %s34_s12 = sshll.u32 %s556_s11, 4  ;;  %s24_s14 = sshll.u32 %s557_s13, 4  ;;  %s35_s12 = int_to_ptr.vmem [resolvable:$true] %s34_s12  ;;  %s25_s14 = int_to_ptr.vmem [resolvable:$true] %s24_s14 }
   0x6   :  { %s486_s17 = scalar_lea.hbm %s695_s1, 128 }
   0x7   :  { %p487_p0 = scmp.ne.s32.totalorder %s695_s1, %s486_s17  ;;  %p490_p1 = scmp.lt.u32.totalorder %s486_s17, %s695_s1 }
   0x9   :  { %p492_p2 = pnand %p490_p1, %p487_p0 }
   0xb   :  { %495 = shalt.err (!%p492_p2)
}
   0xc   :  { %s496_s8 = scalar_lea.vmem %s35_s12, 128  ;;  %p501_p4 = scmp.lt.s32.totalorder %s35_s12, %s35_s12 }
   0xd   :  { %p497_p3 = scmp.ne.s32.totalorder %s35_s12, %s496_s8  ;;  %p502_p5 = scmp.lt.s32.totalorder %s496_s8, %s496_s8 }
   0xf   :  { %p503_p6 = por %p502_p5, %p501_p4 }
  0x11   :  { %p504_p7 = pnand %p503_p6, %p497_p3 }
  0x13   :  { %507 = shalt.err (!%p504_p7)
}
  0x14   :  { %37 = dma.hbm_to_vmem [thread:$0]  %s695_s1, 128, %s35_s12, [#allocation6]  }
  0x15   :  { %s508_s26 = scalar_lea.hbm %s694_s0, 128 }
  0x16   :  { %p509_p8 = scmp.ne.s32.totalorder %s694_s0, %s508_s26  ;;  %p512_p9 = scmp.lt.u32.totalorder %s508_s26, %s694_s0 }
  0x18   :  { %p514_p10 = pnand %p512_p9, %p509_p8 }
  0x1a   :  { %517 = shalt.err (!%p514_p10)
}
  0x1b   :  { %s518_s10 = scalar_lea.vmem %s25_s14, 128  ;;  %p523_p12 = scmp.lt.s32.totalorder %s25_s14, %s25_s14 }
  0x1c   :  { %p519_p11 = scmp.ne.s32.totalorder %s25_s14, %s518_s10  ;;  %p524_p13 = scmp.lt.s32.totalorder %s518_s10, %s518_s10 }
  0x1e   :  { %p525_p0 = por %p524_p13, %p523_p12 }
  0x20   :  { %p526_p1 = pnand %p525_p0, %p519_p11 }
  0x22   :  { %529 = shalt.err (!%p526_p1)
}
  0x23   :  { %27 = dma.hbm_to_vmem [thread:$0]  %s694_s0, 128, %s25_s14, [#allocation4]  }
  0x24   :  { %s558_s12 = smov [#allocation7]   ;;  %s530_s17 = scalar_lea.hbm %s697_s3, 128 }
  0x25   :  { %s46_s13 = sshll.u32 %s558_s12, 4  ;;  %p531_p2 = scmp.ne.s32.totalorder %s697_s3, %s530_s17  ;;  %s47_s13 = int_to_ptr.vmem [resolvable:$true] %s46_s13 }
  0x26   :  { %p534_p3 = scmp.lt.u32.totalorder %s530_s17, %s697_s3 }
  0x28   :  { %p536_p4 = pnand %p534_p3, %p531_p2 }
  0x2a   :  { %539 = shalt.err (!%p536_p4)
}
  0x2b   :  { %s540_s8 = scalar_lea.vmem %s47_s13, 128  ;;  %p545_p6 = scmp.lt.s32.totalorder %s47_s13, %s47_s13 }
  0x2c   :  { %p541_p5 = scmp.ne.s32.totalorder %s47_s13, %s540_s8  ;;  %p546_p7 = scmp.lt.s32.totalorder %s540_s8, %s540_s8 }
  0x2e   :  { %p547_p8 = por %p546_p7, %p545_p6 }
  0x30   :  { %p548_p9 = pnand %p547_p8, %p541_p5 }
  0x32   :  { %551 = shalt.err (!%p548_p9)
}
  0x33   :  { %49 = dma.hbm_to_vmem [thread:$0]  %s697_s3, 128, %s47_s13, [#allocation6]  }
  0x34   :  { %552 = dma.done.wait [#allocation4], 128  }
  0x35   :  { %553 = vsyncadd [#allocation4], 4294967168 }
  0x36   :  { %554 = dma.done.wait [#allocation6], 256  }
  0x37   :  { %555 = vsyncadd [#allocation6], 4294967040  ;;  %v559_v1 = vmov 0.0|0.0   ;;  %v560_v2 = vmov 0.0   ;;  %vm561_vm0 = vmmov 0   ;;  %vm74_vm1 = vcmask 64512  }
  0x38   :  { %465 = vmatprep.subr.bf16.mxu1 %v559_v1  ;;  %431 = vmatprep.subr.mxu0 %v560_v2  ;;  %v70_v3 = vld [vmem:[%s696_s2] sm:$0xff]  ;;  %v71_v4 = vld [vmem:[%s696_s2 + $0x8] sm:$0xff]  ;;  %v73_v5 = vld [vmem:[#allocation7] sm:$0xff]  ;;  %vm148_vm2 = vcmask 130048   ;;  %vm242_vm3 = vcmask 261120   ;;  %vm401_vm4 = vcmask 7168  }
  0x39   :  { %433 = vmatprep.mubr.msk.f32.mxu0 %vm561_vm0, %v560_v2  ;;  %440 = vmatprep.mubr.msk.f32.mxu1 %vm561_vm0, %v560_v2  ;;  %v466_v6 = vpack.c.bf16 %v71_v4, %v70_v3  ;;  %v72_v7 = vld [vmem:[#allocation5] sm:$0xff]  ;;  %v69_v8 = vld [vmem:[#allocation3] sm:$0xff]  ;;  %v234_v13 = vld [vmem:[%s699_s5 + $0x18] sm:$0xff] }
  0x3a   :  { %432 = vmatpush3.msra.mxu0 %v73_v5  ;;  %v231_v9 = vld [vmem:[%s699_s5] sm:$0xff]  ;;  %v232_v10 = vld [vmem:[%s699_s5 + $0x8] sm:$0xff]  ;;  %v233_v12 = vld [vmem:[%s699_s5 + $0x10] sm:$0xff] }
  0x3b   :  { %434 = vmatmul.mubr.msk.f32.vlgmr.msra.gmra.mrb[0].mxu0 %vm74_vm1, %v72_v7  ;;  %468 = vmatprep.subr.bf16.mxu0 %v559_v1  ;;  %v469_v11 = vpack.c.bf16 %v232_v10, %v231_v9  ;;  %v472_v14 = vpack.c.bf16 %v234_v13, %v233_v12  ;;  %v317_v15 = vld [vmem:[%s701_s7] sm:$0xff]  ;;  %v318_v16 = vld [vmem:[%s701_s7 + $0x8] sm:$0xff]  ;;  %v319_v26 = vld [vmem:[%s701_s7 + $0x10] sm:$0xff] }
  0x3c   :  { %467 = vmatpush3.bf16.msra.mxu1 %v466_v6  ;;  %451 = vmatprep.mubr.msk.f32.mxu0 %vm561_vm0, %v560_v2  ;;  %v475_v17 = vpack.c.bf16 %v318_v16, %v317_v15  ;;  %v411_v21 = vld [vmem:[%s698_s4] ss:$0 sm:$0xff]  ;;  %v320_v27 = vld [vmem:[%s701_s7 + $0x18] sm:$0xff] }
  0x3d   :  { %474 = vmatprep.subr.bf16.mxu1 %v559_v1  ;;  %470 = vmatpush3.bf16.msra.mxu0 %v469_v11  ;;  %v478_v28 = vpack.c.bf16 %v320_v27, %v319_v26  ;;  %v412_v29 = vld [vmem:[%s700_s6] ss:$0 sm:$0xff] }
  0x3e   :  { %471 = vmatprep.subr.bf16.mxu0 %v559_v1  ;;  %v414_v34 = vld [vmem:[#allocation2] ss:$0 sm:$0xff] }
  0x3f   :  { %441 = vmatmul.mubr.msk.f32.vlgmr.msra.gmra.mrb[0].mxu1 %vm148_vm2, %v69_v8 }
  0x40   :  { %462 = vmatprep.mubr.msk.f32.mxu1 %vm561_vm0, %v560_v2  ;;  %476 = vmatpush3.bf16.msra.mxu1 %v475_v17 }
  0x41   :  { %473 = vmatpush3.bf16.msra.mxu0 %v472_v14  ;;  %477 = vmatprep.subr.bf16.mxu1 %v559_v1 }
  0x44   :  { %479 = vmatpush3.bf16.msra.mxu1 %v478_v28 }
 0x10e   :  { %v144_v18 = vpop.f32.mrb[0].mxu0 }
 0x10f   :  { %v435_v19 = vpop.f32.mrb[1].mxu0 }
 0x112   :  { %v218_v20 = vpop.f32.mrb[0].mxu1 }
 0x113   :  { %v219_v22 = vadd.f32 %v218_v20, %v144_v18  ;;  %v442_v23 = vpop.f32.mrb[1].mxu1 }
 0x115   :  { %v229_v24 = vadd.f32 %v411_v21, %v219_v22 }
 0x117   :  { %v230_v25 = vmax.f32 %v229_v24, 0.0 }
 0x119   :  { %452 = vmatmul.mubr.msk.f32.vlgmr.msra.gmra.mrb[2].mxu0 %vm242_vm3, %v230_v25 }
 0x1ec   :  { %v312_v30 = vpop.f32.mrb[2].mxu0 }
 0x1ed   :  { %v313_v31 = vadd.f32 %v412_v29, %v312_v30  ;;  %v453_v32 = vpop.f32.mrb[3].mxu0 }
 0x1ef   :  { %v316_v33 = vmax.f32 %v313_v31, 0.0 }
 0x1f1   :  { %463 = vmatmul.mubr.msk.f32.vlgmr.msra.gmra.mrb[2].mxu1 %vm242_vm3, %v316_v33 }
 0x2c4   :  { %v397_v35 = vpop.f32.mrb[2].mxu1 }
 0x2c5   :  { %v398_v36 = vadd.f32 %v414_v34, %v397_v35  ;;  %v464_v37 = vpop.f32.mrb[3].mxu1 }
 0x2c7   :  { %402 = vst.msk [vmem:[%s703_s9] sm:$0xff] %vm401_vm4, %v398_v36 }
 0x2c8   :  { %407 = vsyncpa [#allocation4], 1 }
 0x2c9   :  { %408 = vsyncpa [#allocation6], 1 }

</bundles_post_ra>
